<compile_context>
chip_gen: v5e
topology: v5e:2x2
jax: 0.10.0
libtpu: 0.0.40
codegen_flags: <defaults>
</compile_context>

<pallas_src>
import functools

import jax
import jax.numpy as jnp
from jax.experimental import pallas as pl
from jax.experimental.pallas import tpu as pltpu

EPS = 1e-5
SUBLANE = 8


def _round_up(x, m):
    return (x + m - 1) // m * m


def _vmem_limit_bytes():
    """Generation-specific scoped-VMEM budget (~3/4 of capacity, clamped to [32,96] MiB)."""
    cap = 64 << 20
    try:
        cap = int(pltpu.get_tpu_info().vmem_capacity_bytes)
    except Exception:
        pass
    return int(min(max(cap * 3 // 4, 32 << 20), 96 << 20))


def _pick_row_tile(H, bytes_per_row, budget):
    """Largest divisor of H (multiple of 8, or H itself) whose double-buffered tile fits."""
    for th in range(H, 0, -1):
        if H % th != 0:
            continue
        if th % SUBLANE != 0 and th != H:
            continue
        if 2 * (th + 2) * bytes_per_row <= budget:
            return th
    return H


# ----------------------------------------------------------------------------- kernels


def _conv_stage_kernel(x_ref, scale_ref, shift_ref, w_ref, b_ref, y_ref, st_ref,
                       *, apply_act: bool, H: int):
    """3x3 conv (pad=1) over one row tile, optionally fused with the PREVIOUS stage's
    BatchNorm affine + ReLU on the input, plus per-block BN partial statistics.

    Layouts ((w, channel) packed jointly onto the lane axis -> lane-dense at tiny C):
      x_ref     : (1, Hp, Wp*Ci)   raw (pre-activation) input, spatially zero-padded
      scale/shift: (1, Wp*Ci)      prev-stage BN scale/shift, lane-expanded over w,
                                   zeroed on the two spatial-pad columns / pad channels
      w_ref     : (3, Wp*Ci, W*Co) block-Toeplitz weight slabs, one per kh tap
      b_ref     : (1, W*Co)        bias, lane-expanded over w
      y_ref     : (1, TH, W*Co)    raw conv output rows of this tile
      st_ref    : (1, 1, 2, W*Co)  [sum, sum_sq] over this tile's TH rows
    """
    r = pl.program_id(1)
    TH = y_ref.shape[1]
    WCo = y_ref.shape[2]
    row0 = pl.multiple_of(r * TH, TH)

    win = x_ref[0, pl.ds(row0, TH + 2), :]                        # (TH+2, Wp*Ci)
    if apply_act:
        # Previous stage's BN + ReLU, fused into this conv's input load.
        act = jnp.maximum(win * scale_ref[...] + shift_ref[...], 0.0)
        # Rows belonging to the spatial zero-padding must stay exactly 0
        # (shift can be positive, so ReLU alone is not enough).
        gi = row0 + jax.lax.broadcasted_iota(jnp.int32, (TH + 2, 1), 0)
        act = jnp.where((gi >= 1) & (gi <= H), act, 0.0)
    else:
        act = win

    # Three MXU contractions (one per kh tap) against block-Toeplitz weights.
    # TODO(synk): optionally cast operands to bf16 (keep f32 accumulation) on v6e/v7x.
    acc = jnp.dot(act[0:TH, :], w_ref[0], preferred_element_type=jnp.float32)
    acc = acc + jnp.dot(act[1:TH + 1, :], w_ref[1], preferred_element_type=jnp.float32)
    acc = acc + jnp.dot(act[2:TH + 2, :], w_ref[2], preferred_element_type=jnp.float32)
    acc = acc + b_ref[...]

    # Per-block BatchNorm partial stats; the tiny global reduction runs in the wrapper.
    # (f32 sum / sum-of-squares; fine at these scales — see review's Welford note.)
    s1 = jnp.sum(acc, axis=0, keepdims=True)
    s2 = jnp.sum(acc * acc, axis=0, keepdims=True)
    st_ref[...] = jnp.concatenate([s1, s2], axis=0).reshape(1, 1, 2, WCo)

    # Lane-dense store: minor dim is W*Co_pad.
    y_ref[...] = acc.reshape(1, TH, WCo)


def _bn_relu_kernel(y_ref, scale_ref, shift_ref, o_ref):
    """Final-stage folded BatchNorm affine + ReLU.  y/o: (1, TB, W*Co); scale/shift: (1, W*Co)."""
    o_ref[...] = jnp.maximum(y_ref[...] * scale_ref[...] + shift_ref[...], 0.0)


# ------------------------------------------------------------------------- host wrappers


def _conv_stage(xp_flat, scale_l, shift_l, w, b, Ci_p, Co_p, H, W, *, apply_act, vmem_limit):
    """One 3x3 conv (+bias) pass over the whole batch; returns raw output + BN mean/var.

    xp_flat : (N, H+2, (W+2)*Ci_p)  spatially zero-padded raw input, (w,c) lane-packed
    returns : y_raw (N, H, W*Co_p), mean (Co_p,), var (Co_p,)
    """
    N = xp_flat.shape[0]
    Hp, Wp = H + 2, W + 2
    WCo = W * Co_p
    WpCi = Wp * Ci_p
    Cout, Cin = w.shape[0], w.shape[1]

    # Block-Toeplitz weight slabs (built once, tiny): bigw[kh, wi*Ci+ci, w*Co+co] =
    # w[co, ci, kh, wi-w] when 0 <= wi-w <= 2, else 0.
    wt = jnp.transpose(w.astype(jnp.float32), (2, 3, 1, 0))               # (3,3,Cin,Cout)
    wt = jnp.pad(wt, ((0, 0), (0, 0), (0, Ci_p - Cin), (0, Co_p - Cout)))  # (3,3,Ci_p,Co_p)
    bigw = jnp.zeros((3, WpCi, WCo), jnp.float32)
    for kw in range(3):
        sel = jnp.eye(Wp, W, k=-kw, dtype=jnp.float32)                    # sel[w+kw, w] = 1
        blk = jnp.einsum("pw,kio->kpiwo", sel, wt[:, kw])                 # (3,Wp,Ci_p,W,Co_p)
        bigw = bigw + blk.reshape(3, WpCi, WCo)
    bias_l = jnp.tile(jnp.pad(b.astype(jnp.float32), (0, Co_p - Cout)), (W,)).reshape(1, WCo)

    row_bytes = 4 * (WpCi + 3 * WCo)
    TH = _pick_row_tile(H, row_bytes, vmem_limit // 4)
    NBH = H // TH

    kernel = functools.partial(_conv_stage_kernel, apply_act=apply_act, H=H)
    y_raw, stats = pl.pallas_call(
        kernel,
        out_shape=(
            jax.ShapeDtypeStruct((N, H, WCo), jnp.float32),
            jax.ShapeDtypeStruct((N, NBH, 2, WCo), jnp.float32),
        ),
        grid_spec=pltpu.PrefetchScalarGridSpec(
            num_scalar_prefetch=0,
            grid=(N, NBH),
            in_specs=[
                # TODO(synk): for large H, switch to halo'd row-window DMA instead of
                # keeping the (small, 8-channel) padded image resident per batch element.
                pl.BlockSpec((1, Hp, WpCi), lambda n, r: (n, 0, 0)),
                pl.BlockSpec((1, WpCi), lambda n, r: (0, 0)),
                pl.BlockSpec((1, WpCi), lambda n, r: (0, 0)),
                pl.BlockSpec((3, WpCi, WCo), lambda n, r: (0, 0, 0)),
                pl.BlockSpec((1, WCo), lambda n, r: (0, 0)),
            ],
            out_specs=[
                pl.BlockSpec((1, TH, WCo), lambda n, r: (n, r, 0)),
                pl.BlockSpec((1, 1, 2, WCo), lambda n, r: (n, r, 0, 0)),
            ],
        ),
        compiler_params=pltpu.CompilerParams(
            dimension_semantics=("parallel", "parallel"),
            vmem_limit_bytes=vmem_limit,
        ),
    )(xp_flat, scale_l, shift_l, bigw, bias_l)

    # Tiny global BN reduction (training-mode batch stats, biased variance over N*H*W).
    tot = jnp.sum(stats, axis=(0, 1)).reshape(2, W, Co_p).sum(axis=1)     # (2, Co_p)
    cnt = float(N * H * W)
    mean = tot[0] / cnt
    var = jnp.maximum(tot[1] / cnt - mean * mean, 0.0)
    return y_raw, mean, var


def _bn_scale_shift(gamma, beta, mean, var, Cout, Co_p):
    g = jnp.pad(gamma.astype(jnp.float32), (0, Co_p - Cout))
    be = jnp.pad(beta.astype(jnp.float32), (0, Co_p - Cout))
    scale = g * jax.lax.rsqrt(var + EPS)
    shift = be - mean * scale
    return scale, shift                                                   # (Co_p,) each


def _lane_affine(scale_c, shift_c, Wtot, zero_edges):
    """Expand per-channel scale/shift to the (w, c)-packed lane layout: (1, Wtot*Cp)."""
    Cp = scale_c.shape[0]
    s = jnp.tile(scale_c, (Wtot,)).reshape(Wtot, Cp)
    t = jnp.tile(shift_c, (Wtot,)).reshape(Wtot, Cp)
    if zero_edges:   # the two spatial-pad columns must map to exactly 0 after the affine
        keep = ((jnp.arange(Wtot) > 0) & (jnp.arange(Wtot) < Wtot - 1)).astype(jnp.float32)
        s = s * keep[:, None]
        t = t * keep[:, None]
    return s.reshape(1, Wtot * Cp), t.reshape(1, Wtot * Cp)


class ConvBlockPallas:
    """JAX/Pallas equivalent of the PyTorch `conv` module (NCHW interface)."""

    def __init__(self, in_features, out_features, key):
        k1, k2, k3, k4 = jax.random.split(key, 4)
        self.w1 = jax.random.normal(k1, (out_features, in_features, 3, 3),
                                    jnp.float32) / jnp.sqrt(in_features * 9.0)
        self.b1 = 0.01 * jax.random.normal(k2, (out_features,), jnp.float32)
        self.w2 = jax.random.normal(k3, (out_features, out_features, 3, 3),
                                    jnp.float32) / jnp.sqrt(out_features * 9.0)
        self.b2 = 0.01 * jax.random.normal(k4, (out_features,), jnp.float32)
        # BatchNorm2d affine params (PyTorch default init: gamma=1, beta=0).
        self.g1 = jnp.ones((out_features,), jnp.float32)
        self.be1 = jnp.zeros((out_features,), jnp.float32)
        self.g2 = jnp.ones((out_features,), jnp.float32)
        self.be2 = jnp.zeros((out_features,), jnp.float32)
        self.in_features = in_features
        self.out_features = out_features

    def __call__(self, x_nchw):
        N, Cin, H, W = x_nchw.shape
        Cout = self.out_features
        Ci_p = _round_up(Cin, SUBLANE)
        Co_p = _round_up(Cout, SUBLANE)
        Hp, Wp = H + 2, W + 2
        vmem_limit = _vmem_limit_bytes()

        # Entry (once): NCHW -> zero-padded, channel-padded, (w,c)-lane-packed layout.
        x = jnp.transpose(x_nchw.astype(jnp.float32), (0, 2, 3, 1))
        xp = jnp.pad(x, ((0, 0), (1, 1), (1, 1), (0, Ci_p - Cin))).reshape(N, Hp, Wp * Ci_p)

        # Stage 1: conv1 + bias (+ BN1 partial stats).  No input activation.
        dummy = jnp.zeros((1, Wp * Ci_p), jnp.float32)
        y1, mean1, var1 = _conv_stage(xp, dummy, dummy, self.w1, self.b1,
                                      Ci_p, Co_p, H, W,
                                      apply_act=False, vmem_limit=vmem_limit)
        sc1, sh1 = _bn_scale_shift(self.g1, self.be1, mean1, var1, Cout, Co_p)

        # Stage 2: BN1 + ReLU fused into conv2's input load; conv2 + bias (+ BN2 stats).
        # TODO(synk): fold this small spatial zero-pad into the kernel (halo'd row DMA).
        y1p = jnp.pad(y1.reshape(N, H, W, Co_p),
                      ((0, 0), (1, 1), (1, 1), (0, 0))).reshape(N, Hp, Wp * Co_p)
        sc1_l, sh1_l = _lane_affine(sc1, sh1, Wp, zero_edges=True)
        y2, mean2, var2 = _conv_stage(y1p, sc1_l, sh1_l, self.w2, self.b2,
                                      Co_p, Co_p, H, W,
                                      apply_act=True, vmem_limit=vmem_limit)
        sc2, sh2 = _bn_scale_shift(self.g2, self.be2, mean2, var2, Cout, Co_p)

        # Final stage: BN2 + ReLU (nothing downstream to fuse it into).  Lane-dense,
        # large row tiles, streaming affine.
        sc2_l, sh2_l = _lane_affine(sc2, sh2, W, zero_edges=False)
        WCo = W * Co_p
        TB = _pick_row_tile(H, 4 * 2 * WCo, vmem_limit // 4)
        out_flat = pl.pallas_call(
            _bn_relu_kernel,
            out_shape=jax.ShapeDtypeStruct((N, H, WCo), jnp.float32),
            grid_spec=pltpu.PrefetchScalarGridSpec(
                num_scalar_prefetch=0,
                grid=(N, H // TB),
                in_specs=[
                    pl.BlockSpec((1, TB, WCo), lambda n, r: (n, r, 0)),
                    pl.BlockSpec((1, WCo), lambda n, r: (0, 0)),
                    pl.BlockSpec((1, WCo), lambda n, r: (0, 0)),
                ],
                out_specs=pl.BlockSpec((1, TB, WCo), lambda n, r: (n, r, 0)),
            ),
            compiler_params=pltpu.CompilerParams(
                dimension_semantics=("parallel", "parallel"),
                vmem_limit_bytes=vmem_limit,
            ),
        )(y2, sc2_l, sh2_l)

        # Exit (once): strip channel padding and return NCHW.
        out = out_flat.reshape(N, H, W, Co_p)[..., :Cout]
        return jnp.transpose(out, (0, 3, 1, 2))


def _reference(x_nchw, m):
    """Pure-JAX reference of the PyTorch module (training-mode BatchNorm)."""
    def stage(x, w, b, g, be):
        y = jax.lax.conv_general_dilated(
            x, w, window_strides=(1, 1), padding=((1, 1), (1, 1)),
            dimension_numbers=("NCHW", "OIHW", "NCHW"))
        y = y + b.reshape(1, -1, 1, 1)
        mean = jnp.mean(y, axis=(0, 2, 3), keepdims=True)
        var = jnp.mean((y - mean) ** 2, axis=(0, 2, 3), keepdims=True)
        y = (y - mean) * jax.lax.rsqrt(var + EPS)
        y = y * g.reshape(1, -1, 1, 1) + be.reshape(1, -1, 1, 1)
        return jnp.maximum(y, 0.0)
    y = stage(x_nchw, m.w1, m.b1, m.g1, m.be1)
    return stage(y, m.w2, m.b2, m.g2, m.be2)


if __name__ == "__main__":
    key = jax.random.PRNGKey(0)
    kx, kp = jax.random.split(key)

    # Small shapes consistent with the module: batch=2, in=4, out=8, spatial 16x16.
    N, Cin, Cout, H, W = 2, 4, 8, 16, 16
    x = jax.random.normal(kx, (N, Cin, H, W), jnp.float32)

    model = ConvBlockPallas(Cin, Cout, kp)
    apply_fn = jax.jit(lambda t: model(t))
    out = jax.block_until_ready(apply_fn(x))

    assert out.shape == (N, Cout, H, W), (out.shape, (N, Cout, H, W))
    assert bool(jnp.all(jnp.isfinite(out)))
    assert bool(jnp.all(out >= 0.0))          # ReLU output

    ref = _reference(x, model)
    max_err = float(jnp.max(jnp.abs(out - ref)))
    assert max_err < 2e-3, f"max abs err {max_err}"

    print("KERNEL_OK")
</pallas_src>

<mosaic_0001>
module attributes {stable_mosaic.version = 11 : i64} {
  func.func @_conv_stage_kernel(%arg0: i32, %arg1: i32, %arg2: memref<1x18x144xf32, #tpu.memory_space<vmem>>, %arg3: memref<1x144xf32, #tpu.memory_space<vmem>>, %arg4: memref<1x144xf32, #tpu.memory_space<vmem>>, %arg5: memref<3x144x128xf32, #tpu.memory_space<vmem>>, %arg6: memref<1x128xf32, #tpu.memory_space<vmem>>, %arg7: memref<1x16x128xf32, #tpu.memory_space<vmem>>, %arg8: memref<1x1x2x128xf32, #tpu.memory_space<vmem>>) attributes {dimension_semantics = [#tpu.dimension_semantics<parallel>, #tpu.dimension_semantics<parallel>], iteration_bounds = array<i64: 2, 1>, scalar_prefetch = 0 : i64, scratch_operands = 0 : i64, tpu.core_type = #tpu.core_type<tc>, window_params = [{transform_indices = @transform_0, window_bounds = array<i64: 1, 18, 144>}, {pipeline_mode = #tpu.pipeline_mode<synchronous>, transform_indices = @transform_1, window_bounds = array<i64: 1, 144>}, {pipeline_mode = #tpu.pipeline_mode<synchronous>, transform_indices = @transform_2, window_bounds = array<i64: 1, 144>}, {pipeline_mode = #tpu.pipeline_mode<synchronous>, transform_indices = @transform_3, window_bounds = array<i64: 3, 144, 128>}, {pipeline_mode = #tpu.pipeline_mode<synchronous>, transform_indices = @transform_4, window_bounds = array<i64: 1, 128>}, {transform_indices = @transform_5, window_bounds = array<i64: 1, 16, 128>}, {transform_indices = @transform_6, window_bounds = array<i64: 1, 1, 2, 128>}]} {
    %c16_i32 = arith.constant 16 : i32
    %0 = arith.muli %arg1, %c16_i32 : i32
    %1 = tpu.assume_multiple %0, 16 : i32
    %c0 = arith.constant 0 : index
    %2 = arith.index_cast %1 : i32 to index
    %c0_0 = arith.constant 0 : index
    %3 = vector.load %arg2[%c0, %2, %c0_0] : memref<1x18x144xf32, #tpu.memory_space<vmem>>, vector<1x18x144xf32>
    %4 = vector.shape_cast %3 : vector<1x18x144xf32> to vector<18x144xf32>
    %5 = vector.extract_strided_slice %4 {offsets = [0, 0], sizes = [16, 144], strides = [1, 1]} : vector<18x144xf32> to vector<16x144xf32>
    %c0_1 = arith.constant 0 : index
    %c0_2 = arith.constant 0 : index
    %c0_3 = arith.constant 0 : index
    %6 = vector.load %arg5[%c0_1, %c0_2, %c0_3] : memref<3x144x128xf32, #tpu.memory_space<vmem>>, vector<1x144x128xf32>
    %7 = vector.shape_cast %6 : vector<1x144x128xf32> to vector<144x128xf32>
    %cst = arith.constant dense<0.000000e+00> : vector<16x128xf32>
    %8 = tpu.matmul %5, %7, %cst {dimension_numbers = #tpu.dot_dimension_numbers<[1], [0], [0], [1], [0, 0, 1, 1], [], []>} : vector<16x144xf32>, vector<144x128xf32>, vector<16x128xf32> -> vector<16x128xf32>
    %9 = vector.extract_strided_slice %4 {offsets = [1, 0], sizes = [16, 144], strides = [1, 1]} : vector<18x144xf32> to vector<16x144xf32>
    %c1 = arith.constant 1 : index
    %c0_4 = arith.constant 0 : index
    %c0_5 = arith.constant 0 : index
    %10 = vector.load %arg5[%c1, %c0_4, %c0_5] : memref<3x144x128xf32, #tpu.memory_space<vmem>>, vector<1x144x128xf32>
    %11 = vector.shape_cast %10 : vector<1x144x128xf32> to vector<144x128xf32>
    %cst_6 = arith.constant dense<0.000000e+00> : vector<16x128xf32>
    %12 = tpu.matmul %9, %11, %cst_6 {dimension_numbers = #tpu.dot_dimension_numbers<[1], [0], [0], [1], [0, 0, 1, 1], [], []>} : vector<16x144xf32>, vector<144x128xf32>, vector<16x128xf32> -> vector<16x128xf32>
    %13 = arith.addf %8, %12 : vector<16x128xf32>
    %14 = vector.extract_strided_slice %4 {offsets = [2, 0], sizes = [16, 144], strides = [1, 1]} : vector<18x144xf32> to vector<16x144xf32>
    %c2 = arith.constant 2 : index
    %c0_7 = arith.constant 0 : index
    %c0_8 = arith.constant 0 : index
    %15 = vector.load %arg5[%c2, %c0_7, %c0_8] : memref<3x144x128xf32, #tpu.memory_space<vmem>>, vector<1x144x128xf32>
    %16 = vector.shape_cast %15 : vector<1x144x128xf32> to vector<144x128xf32>
    %cst_9 = arith.constant dense<0.000000e+00> : vector<16x128xf32>
    %17 = tpu.matmul %14, %16, %cst_9 {dimension_numbers = #tpu.dot_dimension_numbers<[1], [0], [0], [1], [0, 0, 1, 1], [], []>} : vector<16x144xf32>, vector<144x128xf32>, vector<16x128xf32> -> vector<16x128xf32>
    %18 = arith.addf %13, %17 : vector<16x128xf32>
    %c0_10 = arith.constant 0 : index
    %c0_11 = arith.constant 0 : index
    %19 = vector.load %arg6[%c0_10, %c0_11] : memref<1x128xf32, #tpu.memory_space<vmem>>, vector<1x128xf32>
    %20 = vector.broadcast %19 : vector<1x128xf32> to vector<16x128xf32>
    %21 = arith.addf %18, %20 : vector<16x128xf32>
    %cst_12 = arith.constant dense<0.000000e+00> : vector<128xf32>
    %22 = vector.multi_reduction <add>, %21, %cst_12 [0] : vector<16x128xf32> to vector<128xf32>
    %23 = vector.shape_cast %22 : vector<128xf32> to vector<1x128xf32>
    %24 = arith.mulf %21, %21 : vector<16x128xf32>
    %cst_13 = arith.constant dense<0.000000e+00> : vector<128xf32>
    %25 = vector.multi_reduction <add>, %24, %cst_13 [0] : vector<16x128xf32> to vector<128xf32>
    %26 = vector.shape_cast %25 : vector<128xf32> to vector<1x128xf32>
    %27 = tpu.concatenate %23, %26 in 0 : vector<1x128xf32>, vector<1x128xf32> -> vector<2x128xf32>
    %28 = vector.shape_cast %27 : vector<2x128xf32> to vector<1x1x2x128xf32>
    %c0_14 = arith.constant 0 : index
    %c0_15 = arith.constant 0 : index
    %c0_16 = arith.constant 0 : index
    %c0_17 = arith.constant 0 : index
    %29 = vector.load %arg8[%c0_14, %c0_15, %c0_16, %c0_17] : memref<1x1x2x128xf32, #tpu.memory_space<vmem>>, vector<1x1x2x128xf32>
    tpu.vector_store %arg8[%c0_14, %c0_15, %c0_16, %c0_17], %28 {strides = array<i32>} : memref<1x1x2x128xf32, #tpu.memory_space<vmem>>, vector<1x1x2x128xf32>,
    %30 = vector.shape_cast %21 : vector<16x128xf32> to vector<1x16x128xf32>
    %c0_18 = arith.constant 0 : index
    %c0_19 = arith.constant 0 : index
    %c0_20 = arith.constant 0 : index
    %31 = vector.load %arg7[%c0_18, %c0_19, %c0_20] : memref<1x16x128xf32, #tpu.memory_space<vmem>>, vector<1x16x128xf32>
    tpu.vector_store %arg7[%c0_18, %c0_19, %c0_20], %30 {strides = array<i32>} : memref<1x16x128xf32, #tpu.memory_space<vmem>>, vector<1x16x128xf32>,
    return
  }
  func.func @transform_0(%arg0: i32, %arg1: i32) -> (i32, i32, i32) {
    %c0_i32 = arith.constant 0 : i32
    %c0_i32_0 = arith.constant 0 : i32
    %c0_i32_1 = arith.constant 0 : i32
    return %arg0, %c0_i32, %c0_i32_0 : i32, i32, i32
  }
  func.func @transform_1(%arg0: i32, %arg1: i32) -> (i32, i32) {
    %c0_i32 = arith.constant 0 : i32
    %c0_i32_0 = arith.constant 0 : i32
    %c0_i32_1 = arith.constant 0 : i32
    return %c0_i32, %c0_i32_0 : i32, i32
  }
  func.func @transform_2(%arg0: i32, %arg1: i32) -> (i32, i32) {
    %c0_i32 = arith.constant 0 : i32
    %c0_i32_0 = arith.constant 0 : i32
    %c0_i32_1 = arith.constant 0 : i32
    return %c0_i32, %c0_i32_0 : i32, i32
  }
  func.func @transform_3(%arg0: i32, %arg1: i32) -> (i32, i32, i32) {
    %c0_i32 = arith.constant 0 : i32
    %c0_i32_0 = arith.constant 0 : i32
    %c0_i32_1 = arith.constant 0 : i32
    %c0_i32_2 = arith.constant 0 : i32
    return %c0_i32, %c0_i32_0, %c0_i32_1 : i32, i32, i32
  }
  func.func @transform_4(%arg0: i32, %arg1: i32) -> (i32, i32) {
    %c0_i32 = arith.constant 0 : i32
    %c0_i32_0 = arith.constant 0 : i32
    %c0_i32_1 = arith.constant 0 : i32
    return %c0_i32, %c0_i32_0 : i32, i32
  }
  func.func @transform_5(%arg0: i32, %arg1: i32) -> (i32, i32, i32) {
    %c0_i32 = arith.constant 0 : i32
    %c0_i32_0 = arith.constant 0 : i32
    return %arg0, %arg1, %c0_i32 : i32, i32, i32
  }
  func.func @transform_6(%arg0: i32, %arg1: i32) -> (i32, i32, i32, i32) {
    %c0_i32 = arith.constant 0 : i32
    %c0_i32_0 = arith.constant 0 : i32
    %c0_i32_1 = arith.constant 0 : i32
    return %arg0, %arg1, %c0_i32, %c0_i32_0 : i32, i32, i32, i32
  }
}

module attributes {stable_mosaic.version = 11 : i64} {
  func.func @_conv_stage_kernel(%arg0: i32, %arg1: i32, %arg2: memref<1x18x144xf32, #tpu.memory_space<vmem>>, %arg3: memref<1x144xf32, #tpu.memory_space<vmem>>, %arg4: memref<1x144xf32, #tpu.memory_space<vmem>>, %arg5: memref<3x144x128xf32, #tpu.memory_space<vmem>>, %arg6: memref<1x128xf32, #tpu.memory_space<vmem>>, %arg7: memref<1x16x128xf32, #tpu.memory_space<vmem>>, %arg8: memref<1x1x2x128xf32, #tpu.memory_space<vmem>>) attributes {dimension_semantics = [#tpu.dimension_semantics<parallel>, #tpu.dimension_semantics<parallel>], iteration_bounds = array<i64: 2, 1>, scalar_prefetch = 0 : i64, scratch_operands = 0 : i64, tpu.core_type = #tpu.core_type<tc>, window_params = [{transform_indices = @transform_0, window_bounds = array<i64: 1, 18, 144>}, {pipeline_mode = #tpu.pipeline_mode<synchronous>, transform_indices = @transform_1, window_bounds = array<i64: 1, 144>}, {pipeline_mode = #tpu.pipeline_mode<synchronous>, transform_indices = @transform_2, window_bounds = array<i64: 1, 144>}, {pipeline_mode = #tpu.pipeline_mode<synchronous>, transform_indices = @transform_3, window_bounds = array<i64: 3, 144, 128>}, {pipeline_mode = #tpu.pipeline_mode<synchronous>, transform_indices = @transform_4, window_bounds = array<i64: 1, 128>}, {transform_indices = @transform_5, window_bounds = array<i64: 1, 16, 128>}, {transform_indices = @transform_6, window_bounds = array<i64: 1, 1, 2, 128>}]} {
    %c16_i32 = arith.constant 16 : i32
    %0 = arith.muli %arg1, %c16_i32 : i32
    %1 = tpu.assume_multiple %0, 16 : i32
    %c0 = arith.constant 0 : index
    %2 = arith.index_cast %1 : i32 to index
    %c0_0 = arith.constant 0 : index
    %3 = vector.load %arg2[%c0, %2, %c0_0] : memref<1x18x144xf32, #tpu.memory_space<vmem>>, vector<1x18x144xf32>
    %4 = vector.shape_cast %3 : vector<1x18x144xf32> to vector<18x144xf32>
    %c0_1 = arith.constant 0 : index
    %c0_2 = arith.constant 0 : index
    %5 = vector.load %arg3[%c0_1, %c0_2] : memref<1x144xf32, #tpu.memory_space<vmem>>, vector<1x144xf32>
    %6 = vector.broadcast %5 : vector<1x144xf32> to vector<18x144xf32>
    %7 = arith.mulf %4, %6 : vector<18x144xf32>
    %c0_3 = arith.constant 0 : index
    %c0_4 = arith.constant 0 : index
    %8 = vector.load %arg4[%c0_3, %c0_4] : memref<1x144xf32, #tpu.memory_space<vmem>>, vector<1x144xf32>
    %9 = vector.broadcast %8 : vector<1x144xf32> to vector<18x144xf32>
    %10 = arith.addf %7, %9 : vector<18x144xf32>
    %cst = arith.constant 0.000000e+00 : f32
    %11 = vector.broadcast %cst : f32 to vector<18x144xf32>
    %12 = arith.maximumf %10, %11 : vector<18x144xf32>
    %13 = tpu.iota {dimensions = array<i32: 0>} : vector<18x1xi32>
    %14 = vector.broadcast %1 : i32 to vector<18x1xi32>
    %15 = arith.addi %14, %13 : vector<18x1xi32>
    %c1_i32 = arith.constant 1 : i32
    %16 = vector.broadcast %c1_i32 : i32 to vector<18x1xi32>
    %17 = arith.cmpi sge, %15, %16 : vector<18x1xi32>
    %c16_i32_5 = arith.constant 16 : i32
    %18 = vector.broadcast %c16_i32_5 : i32 to vector<18x1xi32>
    %19 = arith.cmpi sle, %15, %18 : vector<18x1xi32>
    %20 = arith.andi %17, %19 : vector<18x1xi1>
    %cst_6 = arith.constant 0.000000e+00 : f32
    %21 = vector.shape_cast %20 : vector<18x1xi1> to vector<18x1xi1>
    %22 = vector.broadcast %21 : vector<18x1xi1> to vector<18x144xi1>
    %23 = vector.broadcast %cst_6 : f32 to vector<18x144xf32>
    %24 = arith.select %22, %12, %23 : vector<18x144xi1>, vector<18x144xf32>
    %25 = vector.extract_strided_slice %24 {offsets = [0, 0], sizes = [16, 144], strides = [1, 1]} : vector<18x144xf32> to vector<16x144xf32>
    %c0_7 = arith.constant 0 : index
    %c0_8 = arith.constant 0 : index
    %c0_9 = arith.constant 0 : index
    %26 = vector.load %arg5[%c0_7, %c0_8, %c0_9] : memref<3x144x128xf32, #tpu.memory_space<vmem>>, vector<1x144x128xf32>
    %27 = vector.shape_cast %26 : vector<1x144x128xf32> to vector<144x128xf32>
    %cst_10 = arith.constant dense<0.000000e+00> : vector<16x128xf32>
    %28 = tpu.matmul %25, %27, %cst_10 {dimension_numbers = #tpu.dot_dimension_numbers<[1], [0], [0], [1], [0, 0, 1, 1], [], []>} : vector<16x144xf32>, vector<144x128xf32>, vector<16x128xf32> -> vector<16x128xf32>
    %29 = vector.extract_strided_slice %24 {offsets = [1, 0], sizes = [16, 144], strides = [1, 1]} : vector<18x144xf32> to vector<16x144xf32>
    %c1 = arith.constant 1 : index
    %c0_11 = arith.constant 0 : index
    %c0_12 = arith.constant 0 : index
    %30 = vector.load %arg5[%c1, %c0_11, %c0_12] : memref<3x144x128xf32, #tpu.memory_space<vmem>>, vector<1x144x128xf32>
    %31 = vector.shape_cast %30 : vector<1x144x128xf32> to vector<144x128xf32>
    %cst_13 = arith.constant dense<0.000000e+00> : vector<16x128xf32>
    %32 = tpu.matmul %29, %31, %cst_13 {dimension_numbers = #tpu.dot_dimension_numbers<[1], [0], [0], [1], [0, 0, 1, 1], [], []>} : vector<16x144xf32>, vector<144x128xf32>, vector<16x128xf32> -> vector<16x128xf32>
    %33 = arith.addf %28, %32 : vector<16x128xf32>
    %34 = vector.extract_strided_slice %24 {offsets = [2, 0], sizes = [16, 144], strides = [1, 1]} : vector<18x144xf32> to vector<16x144xf32>
    %c2 = arith.constant 2 : index
    %c0_14 = arith.constant 0 : index
    %c0_15 = arith.constant 0 : index
    %35 = vector.load %arg5[%c2, %c0_14, %c0_15] : memref<3x144x128xf32, #tpu.memory_space<vmem>>, vector<1x144x128xf32>
    %36 = vector.shape_cast %35 : vector<1x144x128xf32> to vector<144x128xf32>
    %cst_16 = arith.constant dense<0.000000e+00> : vector<16x128xf32>
    %37 = tpu.matmul %34, %36, %cst_16 {dimension_numbers = #tpu.dot_dimension_numbers<[1], [0], [0], [1], [0, 0, 1, 1], [], []>} : vector<16x144xf32>, vector<144x128xf32>, vector<16x128xf32> -> vector<16x128xf32>
    %38 = arith.addf %33, %37 : vector<16x128xf32>
    %c0_17 = arith.constant 0 : index
    %c0_18 = arith.constant 0 : index
    %39 = vector.load %arg6[%c0_17, %c0_18] : memref<1x128xf32, #tpu.memory_space<vmem>>, vector<1x128xf32>
    %40 = vector.broadcast %39 : vector<1x128xf32> to vector<16x128xf32>
    %41 = arith.addf %38, %40 : vector<16x128xf32>
    %cst_19 = arith.constant dense<0.000000e+00> : vector<128xf32>
    %42 = vector.multi_reduction <add>, %41, %cst_19 [0] : vector<16x128xf32> to vector<128xf32>
    %43 = vector.shape_cast %42 : vector<128xf32> to vector<1x128xf32>
    %44 = arith.mulf %41, %41 : vector<16x128xf32>
    %cst_20 = arith.constant dense<0.000000e+00> : vector<128xf32>
    %45 = vector.multi_reduction <add>, %44, %cst_20 [0] : vector<16x128xf32> to vector<128xf32>
    %46 = vector.shape_cast %45 : vector<128xf32> to vector<1x128xf32>
    %47 = tpu.concatenate %43, %46 in 0 : vector<1x128xf32>, vector<1x128xf32> -> vector<2x128xf32>
    %48 = vector.shape_cast %47 : vector<2x128xf32> to vector<1x1x2x128xf32>
    %c0_21 = arith.constant 0 : index
    %c0_22 = arith.constant 0 : index
    %c0_23 = arith.constant 0 : index
    %c0_24 = arith.constant 0 : index
    %49 = vector.load %arg8[%c0_21, %c0_22, %c0_23, %c0_24] : memref<1x1x2x128xf32, #tpu.memory_space<vmem>>, vector<1x1x2x128xf32>
    tpu.vector_store %arg8[%c0_21, %c0_22, %c0_23, %c0_24], %48 {strides = array<i32>} : memref<1x1x2x128xf32, #tpu.memory_space<vmem>>, vector<1x1x2x128xf32>,
    %50 = vector.shape_cast %41 : vector<16x128xf32> to vector<1x16x128xf32>
    %c0_25 = arith.constant 0 : index
    %c0_26 = arith.constant 0 : index
    %c0_27 = arith.constant 0 : index
    %51 = vector.load %arg7[%c0_25, %c0_26, %c0_27] : memref<1x16x128xf32, #tpu.memory_space<vmem>>, vector<1x16x128xf32>
    tpu.vector_store %arg7[%c0_25, %c0_26, %c0_27], %50 {strides = array<i32>} : memref<1x16x128xf32, #tpu.memory_space<vmem>>, vector<1x16x128xf32>,
    return
  }
  func.func @transform_0(%arg0: i32, %arg1: i32) -> (i32, i32, i32) {
    %c0_i32 = arith.constant 0 : i32
    %c0_i32_0 = arith.constant 0 : i32
    %c0_i32_1 = arith.constant 0 : i32
    return %arg0, %c0_i32, %c0_i32_0 : i32, i32, i32
  }
  func.func @transform_1(%arg0: i32, %arg1: i32) -> (i32, i32) {
    %c0_i32 = arith.constant 0 : i32
    %c0_i32_0 = arith.constant 0 : i32
    %c0_i32_1 = arith.constant 0 : i32
    return %c0_i32, %c0_i32_0 : i32, i32
  }
  func.func @transform_2(%arg0: i32, %arg1: i32) -> (i32, i32) {
    %c0_i32 = arith.constant 0 : i32
    %c0_i32_0 = arith.constant 0 : i32
    %c0_i32_1 = arith.constant 0 : i32
    return %c0_i32, %c0_i32_0 : i32, i32
  }
  func.func @transform_3(%arg0: i32, %arg1: i32) -> (i32, i32, i32) {
    %c0_i32 = arith.constant 0 : i32
    %c0_i32_0 = arith.constant 0 : i32
    %c0_i32_1 = arith.constant 0 : i32
    %c0_i32_2 = arith.constant 0 : i32
    return %c0_i32, %c0_i32_0, %c0_i32_1 : i32, i32, i32
  }
  func.func @transform_4(%arg0: i32, %arg1: i32) -> (i32, i32) {
    %c0_i32 = arith.constant 0 : i32
    %c0_i32_0 = arith.constant 0 : i32
    %c0_i32_1 = arith.constant 0 : i32
    return %c0_i32, %c0_i32_0 : i32, i32
  }
  func.func @transform_5(%arg0: i32, %arg1: i32) -> (i32, i32, i32) {
    %c0_i32 = arith.constant 0 : i32
    %c0_i32_0 = arith.constant 0 : i32
    return %arg0, %arg1, %c0_i32 : i32, i32, i32
  }
  func.func @transform_6(%arg0: i32, %arg1: i32) -> (i32, i32, i32, i32) {
    %c0_i32 = arith.constant 0 : i32
    %c0_i32_0 = arith.constant 0 : i32
    %c0_i32_1 = arith.constant 0 : i32
    return %arg0, %arg1, %c0_i32, %c0_i32_0 : i32, i32, i32, i32
  }
}

module attributes {stable_mosaic.version = 11 : i64} {
  func.func @_bn_relu_kernel(%arg0: i32, %arg1: i32, %arg2: memref<1x16x128xf32, #tpu.memory_space<vmem>>, %arg3: memref<1x128xf32, #tpu.memory_space<vmem>>, %arg4: memref<1x128xf32, #tpu.memory_space<vmem>>, %arg5: memref<1x16x128xf32, #tpu.memory_space<vmem>>) attributes {dimension_semantics = [#tpu.dimension_semantics<parallel>, #tpu.dimension_semantics<parallel>], iteration_bounds = array<i64: 2, 1>, scalar_prefetch = 0 : i64, scratch_operands = 0 : i64, tpu.core_type = #tpu.core_type<tc>, window_params = [{transform_indices = @transform_0, window_bounds = array<i64: 1, 16, 128>}, {pipeline_mode = #tpu.pipeline_mode<synchronous>, transform_indices = @transform_1, window_bounds = array<i64: 1, 128>}, {pipeline_mode = #tpu.pipeline_mode<synchronous>, transform_indices = @transform_2, window_bounds = array<i64: 1, 128>}, {transform_indices = @transform_3, window_bounds = array<i64: 1, 16, 128>}]} {
    %c0 = arith.constant 0 : index
    %c0_0 = arith.constant 0 : index
    %c0_1 = arith.constant 0 : index
    %0 = vector.load %arg2[%c0, %c0_0, %c0_1] : memref<1x16x128xf32, #tpu.memory_space<vmem>>, vector<1x16x128xf32>
    %c0_2 = arith.constant 0 : index
    %c0_3 = arith.constant 0 : index
    %1 = vector.load %arg3[%c0_2, %c0_3] : memref<1x128xf32, #tpu.memory_space<vmem>>, vector<1x128xf32>
    %2 = vector.shape_cast %1 : vector<1x128xf32> to vector<1x1x128xf32>
    %3 = vector.broadcast %2 : vector<1x1x128xf32> to vector<1x16x128xf32>
    %4 = arith.mulf %0, %3 : vector<1x16x128xf32>
    %c0_4 = arith.constant 0 : index
    %c0_5 = arith.constant 0 : index
    %5 = vector.load %arg4[%c0_4, %c0_5] : memref<1x128xf32, #tpu.memory_space<vmem>>, vector<1x128xf32>
    %6 = vector.shape_cast %5 : vector<1x128xf32> to vector<1x1x128xf32>
    %7 = vector.broadcast %6 : vector<1x1x128xf32> to vector<1x16x128xf32>
    %8 = arith.addf %4, %7 : vector<1x16x128xf32>
    %cst = arith.constant 0.000000e+00 : f32
    %9 = vector.broadcast %cst : f32 to vector<1x16x128xf32>
    %10 = arith.maximumf %8, %9 : vector<1x16x128xf32>
    %c0_6 = arith.constant 0 : index
    %c0_7 = arith.constant 0 : index
    %c0_8 = arith.constant 0 : index
    %11 = vector.load %arg5[%c0_6, %c0_7, %c0_8] : memref<1x16x128xf32, #tpu.memory_space<vmem>>, vector<1x16x128xf32>
    tpu.vector_store %arg5[%c0_6, %c0_7, %c0_8], %10 {strides = array<i32>} : memref<1x16x128xf32, #tpu.memory_space<vmem>>, vector<1x16x128xf32>,
    return
  }
  func.func @transform_0(%arg0: i32, %arg1: i32) -> (i32, i32, i32) {
    %c0_i32 = arith.constant 0 : i32
    %c0_i32_0 = arith.constant 0 : i32
    return %arg0, %arg1, %c0_i32 : i32, i32, i32
  }
  func.func @transform_1(%arg0: i32, %arg1: i32) -> (i32, i32) {
    %c0_i32 = arith.constant 0 : i32
    %c0_i32_0 = arith.constant 0 : i32
    %c0_i32_1 = arith.constant 0 : i32
    return %c0_i32, %c0_i32_0 : i32, i32
  }
  func.func @transform_2(%arg0: i32, %arg1: i32) -> (i32, i32) {
    %c0_i32 = arith.constant 0 : i32
    %c0_i32_0 = arith.constant 0 : i32
    %c0_i32_1 = arith.constant 0 : i32
    return %c0_i32, %c0_i32_0 : i32, i32
  }
  func.func @transform_3(%arg0: i32, %arg1: i32) -> (i32, i32, i32) {
    %c0_i32 = arith.constant 0 : i32
    %c0_i32_0 = arith.constant 0 : i32
    return %arg0, %arg1, %c0_i32 : i32, i32, i32
  }
}

</mosaic_0001>

<bundles_post_ra>
// kernel: tile.31
= control target key start
LH: loop header
LB: loop body
LE: loop exit
PB: predicated region body
PF: predicated region fallthrough
CT: control target
= control target key end

     0   :  { %s28_s0 = inlined_call_operand.vmem [shape: f32[8], index: 0, kind: input, shape index: {}]   ;;  %s29_s1 = inlined_call_operand.vmem [shape: f32[16,8], index: 1, kind: output, shape index: {}]  }
   0x1   :  { %v4_v0 = vld [vmem:[%s28_s0] ss:$0 sm:$0xff] }
   0x2   :  { %5 = vst [vmem:[%s29_s1] sm:$0xff] %v4_v0 }
   0x3   :  { %8 = vst [vmem:[%s29_s1 + $0x8] sm:$0xff] %v4_v0 }

// kernel: tile.32
= control target key start
LH: loop header
LB: loop body
LE: loop exit
PB: predicated region body
PF: predicated region fallthrough
CT: control target
= control target key end

     0   :  { %s131_s10 = smov 120   ;;  %s132_s11 = smov 104   ;;  %vm3_vm0 = vcmask 64512   ;;  %vm9_vm1 = vcmask 1048512   ;;  %vm15_vm2 = vcmask 982912   ;;  %vm21_vm3 = vcmask 917312   ;;  %s207_s0 = inlined_call_operand.vmem [shape: f32[16,8], index: 0, kind: input, shape index: {}]   ;;  %s208_s1 = inlined_call_operand.vmem [shape: f32[1,128], index: 1, kind: output, shape index: {}]  }
   0x1   :  { %v101_v0 = vld [vmem:[%s207_s0 + $0xf] sm:$0x1]   ;;  %v103_v1 = vld [vmem:[%s207_s0 + $0xd] sm:$0x1]   ;;  %v105_v2 = vld [vmem:[%s207_s0 + $0xb] sm:$0x1]  }
   0x2   :  { %7 = vrot.lane.b32.xlu0 %v101_v0, %s131_s10  ;;  %19 = vrot.lane.b32.xlu1 %v103_v1, %s132_s11  ;;  %s133_s14 = smov 88   ;;  %v102_v3 = vld [vmem:[%s207_s0 + $0xe] sm:$0x1]   ;;  %v104_v4 = vld [vmem:[%s207_s0 + $0xc] sm:$0x1]   ;;  %s134_s19 = smov 112  }
   0x3   :  { %31 = vrot.lane.b32.xlu2 %v105_v2, %s133_s14  ;;  %s135_s20 = smov 96   ;;  %v106_v5 = vld [vmem:[%s207_s0 + $0xa] sm:$0x1]   ;;  %s136_s23 = smov 80   ;;  %v107_v6 = vld [vmem:[%s207_s0 + $0x9] sm:$0x1]  }
   0x4   :  { %v108_v7 = vld [vmem:[%s207_s0 + $0x8] sm:$0x1]   ;;  %s137_s28 = smov 72   ;;  %s138_s29 = smov 64   ;;  %v109_v8 = vld [vmem:[%s207_s0 + $0x7] sm:$0x1]  }
   0x5   :  { %s139_s3 = smov 56   ;;  %v110_v9 = vld [vmem:[%s207_s0 + $0x6] sm:$0x1]   ;;  %v111_v10 = vld [vmem:[%s207_s0 + $0x5] sm:$0x1]   ;;  %s140_s8 = smov 48  }
   0x6   :  { %s141_s9 = smov 40   ;;  %v112_v11 = vld [vmem:[%s207_s0 + $0x4] sm:$0x1]   ;;  %s142_s12 = smov 32   ;;  %v113_v12 = vld [vmem:[%s207_s0 + $0x3] sm:$0x1]  }
   0x7   :  { %v114_v13 = vld [vmem:[%s207_s0 + $0x2] sm:$0x1]   ;;  %s143_s17 = smov 24   ;;  %s144_s18 = smov 16   ;;  %v115_v14 = vld [vmem:[%s207_s0 + $0x1] sm:$0x1]  }
   0x8   :  { %s145_s21 = smov 8   ;;  %v2_v15 = vld [vmem:[%s207_s0] sm:$0x1]   ;;  %vm27_vm4 = vcmask 851712   ;;  %vm33_vm5 = vcmask 786112   ;;  %vm39_vm6 = vcmask 720512  }
   0x9   :  { %4 = vst.msk [vmem:[#allocation0] sm:$0x1] %vm3_vm0, %v2_v15   ;;  %vm45_vm7 = vcmask 654912   ;;  %vm51_vm8 = vcmask 589312   ;;  %vm57_vm9 = vcmask 523712   ;;  %vm63_vm10 = vcmask 458112  }
   0xa   :  { %13 = vrot.lane.b32.xlu0 %v102_v3, %s134_s19  ;;  %25 = vrot.lane.b32.xlu1 %v104_v4, %s135_s20  ;;  %vm69_vm11 = vcmask 392512   ;;  %vm75_vm12 = vcmask 326912   ;;  %vm81_vm13 = vcmask 261312   ;;  %vm87_vm14 = vcmask 195712  }
   0xb   :  { %37 = vrot.lane.b32.xlu2 %v106_v5, %s136_s23  ;;  %vm93_vm15 = vcmask 130112  }
  0x12   :  { %43 = vrot.lane.b32.xlu0 %v107_v6, %s137_s28  ;;  %49 = vrot.lane.b32.xlu1 %v108_v7, %s138_s29 }
  0x13   :  { %55 = vrot.lane.b32.xlu2 %v109_v8, %s139_s3 }
  0x1a   :  { %61 = vrot.lane.b32.xlu0 %v110_v9, %s140_s8  ;;  %67 = vrot.lane.b32.xlu1 %v111_v10, %s141_s9 }
  0x1b   :  { %73 = vrot.lane.b32.xlu2 %v112_v11, %s142_s12 }
  0x22   :  { %79 = vrot.lane.b32.xlu0 %v113_v12, %s143_s17  ;;  %85 = vrot.lane.b32.xlu1 %v114_v13, %s144_s18 }
  0x23   :  { %91 = vrot.lane.b32.xlu2 %v115_v14, %s145_s21 }
  0x5d   :  { %v32_v16 = vpop.permute.xlu2 %31  }
  0x65   :  { %v38_v17 = vpop.permute.xlu2 %37  }
  0x6d   :  { %v56_v18 = vpop.permute.xlu2 %55  }
  0x74   :  { %v8_v19 = vpop.permute.xlu0 %7   ;;  %v20_v20 = vpop.permute.xlu1 %19  }
  0x75   :  { %10 = vst.msk [vmem:[#allocation0] sm:$0x1] %vm9_vm1, %v8_v19   ;;  %v74_v21 = vpop.permute.xlu2 %73  }
  0x7c   :  { %v14_v22 = vpop.permute.xlu0 %13   ;;  %v26_v23 = vpop.permute.xlu1 %25  }
  0x7d   :  { %16 = vst.msk [vmem:[#allocation0] sm:$0x1] %vm15_vm2, %v14_v22   ;;  %v92_v24 = vpop.permute.xlu2 %91  }
  0x7e   :  { %22 = vst.msk [vmem:[#allocation0] sm:$0x1] %vm21_vm3, %v20_v20  }
  0x7f   :  { %28 = vst.msk [vmem:[#allocation0] sm:$0x1] %vm27_vm4, %v26_v23  }
  0x80   :  { %34 = vst.msk [vmem:[#allocation0] sm:$0x1] %vm33_vm5, %v32_v16  }
  0x81   :  { %40 = vst.msk [vmem:[#allocation0] sm:$0x1] %vm39_vm6, %v38_v17  }
  0x84   :  { %v44_v25 = vpop.permute.xlu0 %43   ;;  %v50_v26 = vpop.permute.xlu1 %49  }
  0x85   :  { %46 = vst.msk [vmem:[#allocation0] sm:$0x1] %vm45_vm7, %v44_v25  }
  0x86   :  { %52 = vst.msk [vmem:[#allocation0] sm:$0x1] %vm51_vm8, %v50_v26  }
  0x87   :  { %58 = vst.msk [vmem:[#allocation0] sm:$0x1] %vm57_vm9, %v56_v18  }
  0x8c   :  { %v62_v27 = vpop.permute.xlu0 %61   ;;  %v68_v28 = vpop.permute.xlu1 %67  }
  0x8d   :  { %64 = vst.msk [vmem:[#allocation0] sm:$0x1] %vm63_vm10, %v62_v27  }
  0x8e   :  { %70 = vst.msk [vmem:[#allocation0] sm:$0x1] %vm69_vm11, %v68_v28  }
  0x8f   :  { %76 = vst.msk [vmem:[#allocation0] sm:$0x1] %vm75_vm12, %v74_v21  }
  0x94   :  { %v80_v29 = vpop.permute.xlu0 %79   ;;  %v86_v30 = vpop.permute.xlu1 %85  }
  0x95   :  { %82 = vst.msk [vmem:[#allocation0] sm:$0x1] %vm81_vm13, %v80_v29  }
  0x96   :  { %88 = vst.msk [vmem:[#allocation0] sm:$0x1] %vm87_vm14, %v86_v30  }
  0x97   :  { %94 = vst.msk [vmem:[#allocation0] sm:$0x1] %vm93_vm15, %v92_v24  }
  0x9e   :  { %v97_v31 = vld [vmem:[#allocation0] sm:$0x1] }
  0x9f   :  { %100 = vst [vmem:[%s208_s1] sm:$0x1] %v97_v31 }

// kernel: _lambda_.3
= control target key start
LH: loop header
LB: loop body
LE: loop exit
PB: predicated region body
PF: predicated region fallthrough
CT: control target
= control target key end

     0   :  { %s837_s21 = smov 0   ;;  %s839_s22 = smov 0   ;;  %s1075_s0 = inlined_call_operand.vmem [shape: f32[2,18,144], index: 0, kind: input, shape index: {}]   ;;  %s1076_s1 = inlined_call_operand.vmem [shape: f32[1,144], index: 1, kind: input, shape index: {}, may-alias: {1,2}]   ;;  %s1077_s2 = inlined_call_operand.vmem [shape: f32[1,144], index: 2, kind: input, shape index: {}, may-alias: {1,2}]   ;;  %s1078_s3 = inlined_call_operand.vmem [shape: f32[3,144,128], index: 3, kind: input, shape index: {}]   ;;  %s1079_s4 = inlined_call_operand.vmem [shape: f32[1,128], index: 4, kind: input, shape index: {}]   ;;  %s1080_s5 = inlined_call_operand.vmem [shape: f32[2,16,128], index: 5, kind: output, shape index: {0}]   ;;  %s1081_s6 = inlined_call_operand.vmem [shape: f32[2,1,2,128], index: 6, kind: output, shape index: {1}]  }
   0x1   :  { %s841_s1 = smov 0  }
   0x2 LB: > { %s29_s2 = sadd.s32 1, %s796_s22  ;;  %p702_p0 = scmp.ge.s32.totalorder %s800_s1, 1  ;;  %s800_s1 = sphi %s841_s1, %s17_s1   ;;  %s796_s22 = sphi %s839_s22, %s1083_s22   ;;  %s792_s21 = sphi %s837_s21, %s1082_s21  }
   0x3   : > { %p31_p1 = scmp.ge.s32.totalorder %s29_s2, 2  ;;  %p231_p2 = scmp.lt.s32.totalorder %s800_s1, 3 }
   0x5   : > { %s1085_s2 = smov (%p31_p1, %s29_s2), 0  ;;  %p232_p3 = pnand %p702_p0, %p231_p2 }
   0x6   : > { %p272_p4 = scmp.lt.s32.totalorder (!%p232_p3), %s792_s21, 1 }
   0x7   : > { %235 = sbr.rel (%p232_p3) target bundleno = 211 (0xd3), region = 40 }
   0xc   : > { %v722_v0 = vld [vmem:[%s1078_s3 + $0x108] sm:$0xff]  ;;  %v321_v1 = vld [vmem:[%s1078_s3 + $0x78] sm:$0xff]  ;;  %v721_v2 = vld [vmem:[%s1078_s3 + $0x100] sm:$0xff]  ;;  %s1087_s21 = smov (!%p272_p4, %s792_s21), 1  ;;  %vm362_vm0 = vcmask 130048   ;;  %vm349_vm1 = vcmask 1046528  }
   0xd   : > { %367 = vmatpush.msra.mxu0 %v722_v0  ;;  %417 = vmatpush.msra.mxu2 %v321_v1  ;;  %v320_v3 = vld [vmem:[%s1078_s3 + $0x70] sm:$0xff]  ;;  %v720_v4 = vld [vmem:[%s1078_s3 + $0xf8] sm:$0xff]  ;;  %v319_v5 = vld [vmem:[%s1078_s3 + $0x68] sm:$0xff]  ;;  %s752_s19 = smul.u32 48, %s1087_s21  ;;  %vm482_vm2 = vcmask 1045504   ;;  %s751_s27 = sshll.u32 %s1087_s21, 4 }
   0xe   : > { %v724_v6 = vld [vmem:[%s1078_s3 + $0x118] sm:$0xff]  ;;  %v723_v7 = vld [vmem:[%s1078_s3 + $0x110] sm:$0xff]  ;;  %v318_v9 = vld [vmem:[%s1078_s3 + $0x60] sm:$0xff]  ;;  %s285_s9 = scalar_lea.vmem %s1080_s5, %s751_s27  ;;  %s706_s10 = sshll.u32 %s1087_s21, 1  ;;  %vm569_vm3 = vcmask 1040384  }
   0xf   : > { %368 = vmatpush.msra.mxu0 %v721_v2  ;;  %418 = vmatpush.msra.mxu2 %v320_v3  ;;  %v719_v8 = vld [vmem:[%s1078_s3 + $0xf0] sm:$0xff]  ;;  %v744_v10 = vld [vmem:[%s1078_s3 + $0x198] sm:$0xff]  ;;  %v718_v11 = vld [vmem:[%s1078_s3 + $0xe8] sm:$0xff]  ;;  %s900_s30 = scalar_lea.vmem %s1075_s0, %s752_s19  ;;  %s293_s13 = scalar_lea.vmem %s1081_s6, %s706_s10 }
  0x10   : > { %404 = vmatpush.msra.mxu1 %v724_v6  ;;  %v317_v12 = vld [vmem:[%s1078_s3 + $0x58] sm:$0xff]  ;;  %v743_v13 = vld [vmem:[%s1078_s3 + $0x190] sm:$0xff]  ;;  %v323_v14 = vld [vmem:[%s1078_s3 + $0x88] sm:$0xff] }
  0x11   : > { %369 = vmatpush.msra.mxu0 %v720_v4  ;;  %419 = vmatpush.msra.mxu2 %v319_v5  ;;  %v717_v15 = vld [vmem:[%s1078_s3 + $0xe0] sm:$0xff]  ;;  %v316_v16 = vld [vmem:[%s1078_s3 + $0x50] sm:$0xff]  ;;  %v742_v18 = vld [vmem:[%s1078_s3 + $0x188] sm:$0xff] }
  0x12   : > { %405 = vmatpush.msra.mxu1 %v723_v7  ;;  %454 = vmatpush.msra.mxu3 %v323_v14  ;;  %v322_v17 = vld [vmem:[%s1078_s3 + $0x80] sm:$0xff]  ;;  %v921_v19 = vld [vmem:[%s900_s30 + $0x8] sm:$0xff]  ;;  %v716_v20 = vld [vmem:[%s1078_s3 + $0xd8] sm:$0xff] }
  0x13   : > { %370 = vmatpush.msra.mxu0 %v719_v8  ;;  %420 = vmatpush.msra.mxu2 %v318_v9  ;;  %v315_v21 = vld [vmem:[%s1078_s3 + $0x48] sm:$0xff]  ;;  %v741_v22 = vld [vmem:[%s1078_s3 + $0x180] sm:$0xff]  ;;  %v715_v24 = vld [vmem:[%s1078_s3 + $0xd0] sm:$0xff]  ;;  %v353_v34 = vrot.slane %v921_v19, 1  ;;  %v486_v42 = vrot.slane %v921_v19, 2 }
  0x14   : > { %499 = vmatpush.msrb.mxu1 %v744_v10  ;;  %455 = vmatpush.msra.mxu3 %v322_v17  ;;  %v746_v23 = vld [vmem:[%s1078_s3 + $0x1a8] sm:$0xff]  ;;  %v314_v25 = vld [vmem:[%s1078_s3 + $0x40] sm:$0xff]  ;;  %v740_v27 = vld [vmem:[%s1078_s3 + $0x178] sm:$0xff] }
  0x15   : > { %371 = vmatpush.msra.mxu0 %v718_v11  ;;  %421 = vmatpush.msra.mxu2 %v317_v12  ;;  %v714_v26 = vld [vmem:[%s1078_s3 + $0xc8] sm:$0xff]  ;;  %v313_v28 = vld [vmem:[%s1078_s3 + $0x38] sm:$0xff]  ;;  %v745_v30 = vld [vmem:[%s1078_s3 + $0x1a0] sm:$0xff] }
  0x16   : > { %500 = vmatpush.msrb.mxu1 %v743_v13  ;;  %727 = vmatmul.msk.f32.vlgmr.msra.gmra.mxu3 %vm362_vm0, %v921_v19  ;;  %v953_v29 = vld [vmem:[%s900_s30 + $0x18] sm:$0xff]  ;;  %v739_v31 = vld [vmem:[%s1078_s3 + $0x170] sm:$0xff]  ;;  %v713_v32 = vld [vmem:[%s1078_s3 + $0xc0] sm:$0xff] }
  0x17   : > { %372 = vmatpush.msra.mxu0 %v717_v15  ;;  %422 = vmatpush.msra.mxu2 %v316_v16  ;;  %v312_v33 = vld [vmem:[%s1078_s3 + $0x30] sm:$0xff]  ;;  %v738_v35 = vld [vmem:[%s1078_s3 + $0x168] sm:$0xff]  ;;  %v354_v36 = vrot.slane %v953_v29, 1  ;;  %v712_v37 = vld [vmem:[%s1078_s3 + $0xb8] sm:$0xff]  ;;  %v487_v45 = vrot.slane %v953_v29, 2 }
  0x18   : > { %501 = vmatpush.msrb.mxu1 %v742_v18  ;;  %536 = vmatpush.msrb.mxu3 %v746_v23  ;;  %v311_v38 = vld [vmem:[%s1078_s3 + $0x28] sm:$0xff]  ;;  %v737_v39 = vld [vmem:[%s1078_s3 + $0x160] sm:$0xff]  ;;  %v711_v40 = vld [vmem:[%s1078_s3 + $0xb0] sm:$0xff] }
  0x19   : > { %373 = vmatpush.msra.mxu0 %v716_v20  ;;  %423 = vmatpush.msra.mxu2 %v315_v21  ;;  %v310_v41 = vld [vmem:[%s1078_s3 + $0x20] sm:$0xff]  ;;  %v355_v43 = vsel %vm349_vm1, %v353_v34, %v354_v36  ;;  %v710_v44 = vld [vmem:[%s1078_s3 + $0xa8] sm:$0xff]  ;;  %v309_v46 = vld [vmem:[%s1078_s3 + $0x18] sm:$0xff]  ;;  %v488_v56 = vsel %vm482_vm2, %v486_v42, %v487_v45 }
  0x1a   : > { %502 = vmatpush.msrb.mxu1 %v741_v22  ;;  %537 = vmatpush.msrb.mxu3 %v745_v30  ;;  %v300_v47 = vld [vmem:[%s900_s30] sm:$0xff]  ;;  %v302_v48 = vld [vmem:[%s900_s30 + $0x10] sm:$0xff]  ;;  %v736_v49 = vld [vmem:[%s1078_s3 + $0x158] sm:$0xff] }
  0x1b   : > { %374 = vmatpush.msra.mxu0 %v715_v24  ;;  %424 = vmatpush.msra.mxu2 %v314_v25  ;;  %v305_v50 = vld [vmem:[%s900_s30 + $0x28] sm:$0x3]  ;;  %v709_v51 = vld [vmem:[%s1078_s3 + $0xa0] sm:$0xff]  ;;  %v308_v52 = vld [vmem:[%s1078_s3 + $0x10] sm:$0xff]  ;;  %v350_v54 = vrot.slane %v300_v47, 1  ;;  %v351_v55 = vrot.slane %v302_v48, 1 }
  0x1c   : > { %503 = vmatpush.msrb.mxu1 %v740_v27  ;;  %v735_v53 = vld [vmem:[%s1078_s3 + $0x150] sm:$0xff]  ;;  %v708_v57 = vld [vmem:[%s1078_s3 + $0x98] sm:$0xff]  ;;  %v307_v58 = vld [vmem:[%s1078_s3 + $0x8] sm:$0xff]  ;;  %v358_v59 = vrot.slane %v305_v50, 1  ;;  %v491_v1 = vrot.slane %v305_v50, 2  ;;  %v483_v8 = vrot.slane %v300_v47, 2 }
  0x1d   : > { %375 = vmatpush.msra.mxu0 %v714_v26  ;;  %425 = vmatpush.msra.mxu2 %v313_v28  ;;  %v734_v60 = vld [vmem:[%s1078_s3 + $0x148] sm:$0xff]  ;;  %v707_v61 = vld [vmem:[%s1078_s3 + $0x90] sm:$0xff]  ;;  %v306_v62 = vld [vmem:[%s1078_s3] sm:$0xff]  ;;  %v352_v0 = vsel %vm349_vm1, %v350_v54, %v351_v55  ;;  %v484_v9 = vrot.slane %v302_v48, 2 }
  0x1e   : > { %504 = vmatpush.msrb.mxu1 %v739_v31  ;;  %728 = vmatmul.msk.f32.gmra.mxu3 %vm362_vm0, %v953_v29  ;;  %v733_v63 = vld [vmem:[%s1078_s3 + $0x140] sm:$0xff]  ;;  %v359_v2 = vsel %vm349_vm1, %v354_v36, %v358_v59  ;;  %v732_v4 = vld [vmem:[%s1078_s3 + $0x138] sm:$0xff]  ;;  %v731_v5 = vld [vmem:[%s1078_s3 + $0x130] sm:$0xff]  ;;  %v492_v7 = vsel %vm482_vm2, %v487_v45, %v491_v1 }
  0x1f   : > { %376 = vmatpush.msra.mxu0 %v713_v32  ;;  %426 = vmatpush.msra.mxu2 %v312_v33  ;;  %v304_v3 = vld [vmem:[%s900_s30 + $0x20] sm:$0x3]  ;;  %v730_v10 = vld [vmem:[%s1078_s3 + $0x128] sm:$0xff]  ;;  %v485_v13 = vsel %vm482_vm2, %v483_v8, %v484_v9 }
  0x20   : > { %505 = vmatpush.msrb.mxu1 %v738_v35  ;;  %v356_v6 = vrot.slane %v304_v3, 1  ;;  %v729_v11 = vld [vmem:[%s1078_s3 + $0x120] sm:$0xff]  ;;  %v489_v14 = vrot.slane %v304_v3, 2 }
  0x21   : > { %377 = vmatpush.msra.mxu0 %v712_v37  ;;  %427 = vmatpush.msra.mxu2 %v311_v38  ;;  %v777_v28 = vld [vmem:[%s1079_s4] ss:$0 sm:$0xff] }
  0x22   : > { %506 = vmatpush.msrb.mxu1 %v737_v39  ;;  %v357_v12 = vsel %vm349_vm1, %v351_v55, %v356_v6  ;;  %v490_v15 = vsel %vm482_vm2, %v484_v9, %v489_v14 }
  0x23   : > { %378 = vmatpush.msra.mxu0 %v711_v40  ;;  %428 = vmatpush.msra.mxu2 %v310_v41 }
  0x24   : > { %725 = vmatmul.msk.f32.vlgmr.msra.gmra.mxu1 %vm362_vm0, %v355_v43 }
  0x25   : > { %379 = vmatpush.msra.mxu0 %v710_v44  ;;  %429 = vmatpush.msra.mxu2 %v309_v46 }
  0x26   : > { %507 = vmatpush.msrb.mxu1 %v736_v49  ;;  %747 = vmatmul.msk.f32.vlgmr.msrb.gmra.mxu3 %vm362_vm0, %v488_v56 }
  0x27   : > { %380 = vmatpush.msra.mxu0 %v709_v51  ;;  %430 = vmatpush.msra.mxu2 %v308_v52 }
  0x28   : > { %508 = vmatpush.msrb.mxu1 %v735_v53 }
  0x29   : > { %381 = vmatpush.msra.mxu0 %v708_v57  ;;  %431 = vmatpush.msra.mxu2 %v307_v58 }
  0x2a   : > { %509 = vmatpush.msrb.mxu1 %v734_v60 }
  0x2b   : > { %382 = vmatpush.msra.mxu0 %v707_v61  ;;  %432 = vmatpush.msra.mxu2 %v306_v62 }
  0x2c   : > { %510 = vmatpush.msrb.mxu1 %v733_v63  ;;  %383 = vmatmul.f32.vlgmr.msra.gmra.mxu0 %v352_v0 }
  0x2d   : > { %726 = vmatmul.msk.f32.gmra.mxu1 %vm362_vm0, %v359_v2  ;;  %433 = vmatmul.f32.vlgmr.msra.gmra.mxu2 %v300_v47 }
  0x2e   : > { %511 = vmatpush.msrb.mxu1 %v732_v4  ;;  %748 = vmatmul.msk.f32.gmra.mxu3 %vm362_vm0, %v492_v7 }
  0x30   : > { %512 = vmatpush.msrb.mxu1 %v731_v5 }
  0x32   : > { %513 = vmatpush.msrb.mxu1 %v730_v10 }
  0x34   : > { %514 = vmatpush.msrb.mxu1 %v729_v11  ;;  %386 = vmatmul.f32.gmra.mxu0 %v357_v12 }
  0x35   : > { %436 = vmatmul.f32.gmra.mxu2 %v302_v48  ;;  %515 = vmatmul.f32.vlgmr.msrb.gmra.mxu1 %v485_v13 }
  0x3d   : > { %518 = vmatmul.f32.gmra.mxu1 %v490_v15 }
  0x99   : > { %v457_v16 = vpop.f32.mrf.mxu3 }
  0xa1   : > { %v407_v17 = vpop.f32.mrf.mxu1  ;;  %v460_v18 = vpop.f32.mrf.mxu3 }
  0xa9   : > { %v384_v19 = vpop.f32.mrf.mxu0  ;;  %v539_v21 = vpop.f32.mrf.mxu3 }
  0xaa   : > { %v410_v20 = vpop.f32.mrf.mxu1  ;;  %v408_v22 = vadd.f32 %v407_v17, %v384_v19 }
  0xb0   : > { %v434_v23 = vpop.f32.mrf.mxu2 }
  0xb1   : > { %v435_v24 = vadd.f32 %v434_v23, %v408_v22  ;;  %v387_v29 = vpop.f32.mrf.mxu0  ;;  %v542_v34 = vpop.f32.mrf.mxu3 }
  0xb2   : > { %v516_v25 = vpop.f32.mrf.mxu1  ;;  %v411_v31 = vadd.f32 %v410_v20, %v387_v29 }
  0xb3   : > { %v458_v26 = vadd.f32 %v457_v16, %v435_v24  ;;  %v540_v27 = vadd.f32 %v539_v21, %v516_v25 }
  0xb5   : > { %v545_v30 = vadd.f32 %v540_v27, %v458_v26 }
  0xb7   : > { %v551_v32 = vadd.f32 %v777_v28, %v545_v30 }
  0xb8   : > { %v437_v33 = vpop.f32.mrf.mxu2 }
  0xb9   : > { %572 = vst [vmem:[%s285_s9] sm:$0xff] %v551_v32  ;;  %v438_v35 = vadd.f32 %v437_v33, %v411_v31  ;;  %v560_v41 = vmul.f32 %v551_v32, %v551_v32 }
  0xba   : > { %v519_v36 = vpop.f32.mrf.mxu1 }
  0xbb   : > { %v461_v37 = vadd.f32 %v460_v18, %v438_v35  ;;  %v543_v38 = vadd.f32 %v542_v34, %v519_v36 }
  0xbd   : > { %v546_v39 = vadd.f32 %v543_v38, %v461_v37 }
  0xbf   : > { %v552_v40 = vadd.f32 %v777_v28, %v546_v39 }
  0xc1   : > { %v553_v42 = vadd.f32 %v552_v40, %v551_v32  ;;  %v561_v43 = vmul.f32 %v552_v40, %v552_v40  ;;  %573 = vst [vmem:[%s285_s9 + $0x8] sm:$0xff] %v552_v40 }
  0xc3   : > { %v554_v44 = vrot.slane %v553_v42, 4  ;;  %v562_v45 = vadd.f32 %v561_v43, %v560_v41 }
  0xc5   : > { %v555_v46 = vadd.f32 %v554_v44, %v553_v42  ;;  %v563_v47 = vrot.slane %v562_v45, 4 }
  0xc7   : > { %v556_v48 = vrot.slane %v555_v46, 2  ;;  %v564_v49 = vadd.f32 %v563_v47, %v562_v45 }
  0xc9   : > { %v557_v50 = vadd.f32 %v556_v48, %v555_v46  ;;  %v565_v51 = vrot.slane %v564_v49, 2 }
  0xcb   : > { %v558_v52 = vrot.slane %v557_v50, 1  ;;  %v566_v53 = vadd.f32 %v565_v51, %v564_v49 }
  0xcd   : > { %v567_v54 = vrot.slane %v566_v53, 1  ;;  %v559_v55 = vadd.f32 %v558_v52, %v557_v50 }
  0xcf   : > { %v568_v56 = vadd.f32 %v567_v54, %v566_v53 }
  0xd1   : > { %v570_v57 = vsel %vm569_vm3, %v559_v55, %v568_v56 }
  0xd2   : > { %571 = vst [vmem:[%s293_s13] sm:$0x3] %v570_v57 }
  0xd3 PF: > { %s17_s1 = sadd.s32 1, %s800_s1   ;;  %s1082_s21 = smov %s796_s22 }
  0xd4   : > { %p14_p5 = scmp.ge.s32.totalorder %s17_s1, 4   ;;  %s1083_s22 = smov %s1085_s2 }
  0xd6   :  { %16 = sbr.rel (!%p14_p5) target bundleno = 2 (0x2), region = 85 }

// kernel: _lambda_.4
= control target key start
LH: loop header
LB: loop body
LE: loop exit
PB: predicated region body
PF: predicated region fallthrough
CT: control target
= control target key end

     0   :  { %s897_s21 = smov 0   ;;  %s899_s22 = smov 0   ;;  %s1168_s0 = inlined_call_operand.vmem [shape: f32[2,18,144], index: 0, kind: input, shape index: {}]   ;;  %s1169_s1 = inlined_call_operand.vmem [shape: f32[1,144], index: 1, kind: input, shape index: {}]   ;;  %s1170_s2 = inlined_call_operand.vmem [shape: f32[1,144], index: 2, kind: input, shape index: {}]   ;;  %s1171_s3 = inlined_call_operand.vmem [shape: f32[3,144,128], index: 3, kind: input, shape index: {}]   ;;  %s1172_s4 = inlined_call_operand.vmem [shape: f32[1,128], index: 4, kind: input, shape index: {}]   ;;  %s1173_s5 = inlined_call_operand.vmem [shape: f32[2,16,128], index: 5, kind: output, shape index: {0}]   ;;  %s1174_s6 = inlined_call_operand.vmem [shape: f32[2,1,2,128], index: 6, kind: output, shape index: {1}]  }
   0x1   :  { %s901_s23 = smov 0  }
   0x2 LB: > { %s29_s24 = sadd.s32 1, %s856_s22  ;;  %p761_p0 = scmp.ge.s32.totalorder %s860_s23, 1  ;;  %s860_s23 = sphi %s901_s23, %s17_s23   ;;  %s856_s22 = sphi %s899_s22, %s1176_s22   ;;  %s852_s21 = sphi %s897_s21, %s1175_s21  }
   0x3   : > { %p31_p1 = scmp.ge.s32.totalorder %s29_s24, 2  ;;  %p231_p2 = scmp.lt.s32.totalorder %s860_s23, 3 }
   0x5   : > { %s1178_s24 = smov (%p31_p1, %s29_s24), 0  ;;  %p232_p3 = pnand %p761_p0, %p231_p2 }
   0x6   : > { %p272_p4 = scmp.lt.s32.totalorder (!%p232_p3), %s852_s21, 1 }
   0x7   : > { %235 = sbr.rel (%p232_p3) target bundleno = 211 (0xd3), region = 40 }
   0xc   : > { %v781_v0 = vld [vmem:[%s1171_s3 + $0x108] sm:$0xff]  ;;  %v380_v1 = vld [vmem:[%s1171_s3 + $0x78] sm:$0xff]  ;;  %v780_v2 = vld [vmem:[%s1171_s3 + $0x100] sm:$0xff]  ;;  %s1180_s21 = smov (!%p272_p4, %s852_s21), 1  ;;  %v336_v16 = vlaneseq  ;;  %vm421_vm1 = vcmask 130048   ;;  %vm408_vm2 = vcmask 1046528  }
   0xd   : > { %426 = vmatpush.msra.mxu0 %v781_v0  ;;  %476 = vmatpush.msra.mxu2 %v380_v1  ;;  %v379_v3 = vld [vmem:[%s1171_s3 + $0x70] sm:$0xff]  ;;  %v779_v4 = vld [vmem:[%s1171_s3 + $0xf8] sm:$0xff]  ;;  %v378_v5 = vld [vmem:[%s1171_s3 + $0x68] sm:$0xff]  ;;  %s812_s25 = smul.u32 48, %s1180_s21  ;;  %vm541_vm4 = vcmask 1045504   ;;  %s811_s19 = sshll.u32 %s1180_s21, 4 }
   0xe   : > { %v783_v6 = vld [vmem:[%s1171_s3 + $0x118] sm:$0xff]  ;;  %v782_v7 = vld [vmem:[%s1171_s3 + $0x110] sm:$0xff]  ;;  %v377_v9 = vld [vmem:[%s1171_s3 + $0x60] sm:$0xff]  ;;  %v1001_v29 = vshrl.u32 %v336_v16, 7  ;;  %s285_s28 = scalar_lea.vmem %s1173_s5, %s811_s19  ;;  %s765_s29 = sshll.u32 %s1180_s21, 1  ;;  %vm628_vm5 = vcmask 1040384  }
   0xf   : > { %427 = vmatpush.msra.mxu0 %v780_v2  ;;  %477 = vmatpush.msra.mxu2 %v379_v3  ;;  %v778_v8 = vld [vmem:[%s1171_s3 + $0xf0] sm:$0xff]  ;;  %v804_v10 = vld [vmem:[%s1171_s3 + $0x198] sm:$0xff]  ;;  %v777_v11 = vld [vmem:[%s1171_s3 + $0xe8] sm:$0xff]  ;;  %s960_s10 = scalar_lea.vmem %s1168_s0, %s812_s25  ;;  %s293_s8 = scalar_lea.vmem %s1174_s6, %s765_s29 }
  0x10   : > { %463 = vmatpush.msra.mxu1 %v783_v6  ;;  %v376_v12 = vld [vmem:[%s1171_s3 + $0x58] sm:$0xff]  ;;  %v776_v13 = vld [vmem:[%s1171_s3 + $0xe0] sm:$0xff]  ;;  %v803_v14 = vld [vmem:[%s1171_s3 + $0x190] sm:$0xff]  ;;  %vm344_vm0 = vcmp.ge.s32.totalorder %v1001_v29, 1  ;;  %v1049_v53 = vadd.s32 16, %v1001_v29 }
  0x11   : > { %428 = vmatpush.msra.mxu0 %v779_v4  ;;  %478 = vmatpush.msra.mxu2 %v378_v5  ;;  %v382_v15 = vld [vmem:[%s1171_s3 + $0x88] sm:$0xff]  ;;  %v375_v17 = vld [vmem:[%s1171_s3 + $0x50] sm:$0xff]  ;;  %v381_v19 = vld [vmem:[%s1171_s3 + $0x80] sm:$0xff] }
  0x12   : > { %464 = vmatpush.msra.mxu1 %v782_v7  ;;  %v802_v18 = vld [vmem:[%s1171_s3 + $0x188] sm:$0xff]  ;;  %513 = vmatpush.msra.mxu3 %v382_v15  ;;  %v306_v21 = vld [vmem:[%s1169_s1] sm:$0x3]  ;;  %v775_v23 = vld [vmem:[%s1171_s3 + $0xd8] sm:$0xff]  ;;  %vm349_vm3 = vcmp.le.s32.totalorder %v1049_v53, 16 }
  0x13   : > { %429 = vmatpush.msra.mxu0 %v778_v8  ;;  %479 = vmatpush.msra.mxu2 %v377_v9  ;;  %v301_v20 = vld [vmem:[%s960_s10 + $0x8] sm:$0xff]  ;;  %v318_v22 = vld [vmem:[%s1170_s2] sm:$0x3]  ;;  %v309_v25 = vperm.slane %v306_v21, 1  ;;  %v774_v30 = vld [vmem:[%s1171_s3 + $0xd0] sm:$0xff]  ;;  %v308_v39 = vperm.slane %v306_v21, 0 }
  0x14   : > { %558 = vmatpush.msrb.mxu1 %v804_v10  ;;  %v374_v24 = vld [vmem:[%s1171_s3 + $0x48] sm:$0xff]  ;;  %514 = vmatpush.msra.mxu3 %v381_v19  ;;  %v993_v26 = vperm.slane %v318_v22, 1  ;;  %v801_v28 = vld [vmem:[%s1171_s3 + $0x180] sm:$0xff]  ;;  %v800_v33 = vld [vmem:[%s1171_s3 + $0x178] sm:$0xff]  ;;  %v320_v45 = vperm.slane %v318_v22, 0 }
  0x15   : > { %430 = vmatpush.msra.mxu0 %v777_v11  ;;  %480 = vmatpush.msra.mxu2 %v376_v12  ;;  %v806_v27 = vld [vmem:[%s1171_s3 + $0x1a8] sm:$0xff]  ;;  %v373_v31 = vld [vmem:[%s1171_s3 + $0x40] sm:$0xff]  ;;  %v313_v32 = vmul.f32 %v309_v25, %v301_v20  ;;  %v303_v34 = vld [vmem:[%s960_s10 + $0x18] sm:$0xff] }
  0x16   : > { %559 = vmatpush.msrb.mxu1 %v803_v14  ;;  %595 = vmatpush.msrb.mxu3 %v806_v27  ;;  %v773_v35 = vld [vmem:[%s1171_s3 + $0xc8] sm:$0xff]  ;;  %v372_v36 = vld [vmem:[%s1171_s3 + $0x38] sm:$0xff]  ;;  %v315_v38 = vmul.f32 %v309_v25, %v303_v34  ;;  %v799_v40 = vld [vmem:[%s1171_s3 + $0x170] sm:$0xff] }
  0x17   : > { %431 = vmatpush.msra.mxu0 %v776_v13  ;;  %481 = vmatpush.msra.mxu2 %v375_v17  ;;  %v325_v37 = vadd.f32 %v993_v26, %v313_v32  ;;  %v805_v41 = vld [vmem:[%s1171_s3 + $0x1a0] sm:$0xff]  ;;  %v371_v46 = vld [vmem:[%s1171_s3 + $0x30] sm:$0xff]  ;;  %v798_v47 = vld [vmem:[%s1171_s3 + $0x168] sm:$0xff] }
  0x18   : > { %560 = vmatpush.msrb.mxu1 %v802_v18  ;;  %v772_v43 = vld [vmem:[%s1171_s3 + $0xc0] sm:$0xff]  ;;  %v327_v44 = vadd.f32 %v993_v26, %v315_v38  ;;  %596 = vmatpush.msrb.mxu3 %v805_v41  ;;  %v771_v49 = vld [vmem:[%s1171_s3 + $0xb8] sm:$0xff]  ;;  %v302_v52 = vld [vmem:[%s960_s10 + $0x10] sm:$0xff] }
  0x19   : > { %432 = vmatpush.msra.mxu0 %v775_v23  ;;  %482 = vmatpush.msra.mxu2 %v374_v24  ;;  %v331_v42 = vmax.f32 %v325_v37, 0.0  ;;  %v300_v51 = vld [vmem:[%s960_s10] sm:$0xff]  ;;  %v370_v55 = vld [vmem:[%s1171_s3 + $0x28] sm:$0xff]  ;;  %v314_v58 = vmul.f32 %v308_v39, %v302_v52  ;;  %v770_v60 = vld [vmem:[%s1171_s3 + $0xb0] sm:$0xff] }
  0x1a   : > { %561 = vmatpush.msrb.mxu1 %v801_v28  ;;  %v1044_v50 = vmax.f32 %v327_v44, 0.0  ;;  %v797_v56 = vld [vmem:[%s1171_s3 + $0x160] sm:$0xff]  ;;  %v312_v57 = vmul.f32 %v308_v39, %v300_v51  ;;  %v305_v59 = vld [vmem:[%s960_s10 + $0x28] sm:$0x3]  ;;  %v796_v1 = vld [vmem:[%s1171_s3 + $0x158] sm:$0xff] }
  0x1b   : > { %433 = vmatpush.msra.mxu0 %v774_v30  ;;  %483 = vmatpush.msra.mxu2 %v373_v31  ;;  %v1039_v48 = vsel %vm344_vm0, %v331_v42, 0.0  ;;  %v317_v62 = vmul.f32 %v309_v25, %v305_v59  ;;  %v304_v63 = vld [vmem:[%s960_s10 + $0x20] sm:$0x3]  ;;  %v326_v3 = vadd.f32 %v320_v45, %v314_v58  ;;  %v769_v6 = vld [vmem:[%s1171_s3 + $0xa8] sm:$0xff]  ;;  %v368_v8 = vld [vmem:[%s1171_s3 + $0x18] sm:$0xff] }
  0x1c   : > { %562 = vmatpush.msrb.mxu1 %v800_v33  ;;  %v412_v54 = vrot.slane %v1039_v48, 1  ;;  %787 = vmatmul.msk.f32.vlgmr.msra.gmra.mxu3 %vm421_vm1, %v1039_v48  ;;  %v413_v61 = vrot.slane %v1044_v50, 1  ;;  %v369_v0 = vld [vmem:[%s1171_s3 + $0x20] sm:$0xff]  ;;  %v324_v2 = vadd.f32 %v320_v45, %v312_v57  ;;  %v316_v4 = vmul.f32 %v308_v39, %v304_v63  ;;  %v795_v9 = vld [vmem:[%s1171_s3 + $0x150] sm:$0xff]  ;;  %v794_v16 = vld [vmem:[%s1171_s3 + $0x148] sm:$0xff] }
  0x1d   : > { %434 = vmatpush.msra.mxu0 %v773_v35  ;;  %484 = vmatpush.msra.mxu2 %v372_v36  ;;  %v329_v7 = vadd.f32 %v993_v26, %v317_v62  ;;  %v1084_v11 = vmax.f32 %v326_v3, 0.0  ;;  %v768_v13 = vld [vmem:[%s1171_s3 + $0xa0] sm:$0xff]  ;;  %v367_v15 = vld [vmem:[%s1171_s3 + $0x10] sm:$0xff]  ;;  %v767_v19 = vld [vmem:[%s1171_s3 + $0x98] sm:$0xff]  ;;  %v545_v26 = vrot.slane %v1039_v48, 2  ;;  %v546_v28 = vrot.slane %v1044_v50, 2 }
  0x1e   : > { %563 = vmatpush.msrb.mxu1 %v799_v40  ;;  %v414_v5 = vsel %vm408_vm2, %v412_v54, %v413_v61  ;;  %v330_v10 = vmax.f32 %v324_v2, 0.0  ;;  %v328_v12 = vadd.f32 %v320_v45, %v316_v4  ;;  %v366_v23 = vld [vmem:[%s1171_s3 + $0x8] sm:$0xff]  ;;  %v793_v24 = vld [vmem:[%s1171_s3 + $0x140] sm:$0xff]  ;;  %v766_v27 = vld [vmem:[%s1171_s3 + $0x90] sm:$0xff] }
  0x1f   : > { %435 = vmatpush.msra.mxu0 %v772_v43  ;;  %485 = vmatpush.msra.mxu2 %v371_v46  ;;  %v335_v14 = vmax.f32 %v329_v7, 0.0  ;;  %v410_v18 = vrot.slane %v1084_v11, 1  ;;  %v365_v30 = vld [vmem:[%s1171_s3] sm:$0xff]  ;;  %v792_v33 = vld [vmem:[%s1171_s3 + $0x138] sm:$0xff]  ;;  %v547_v35 = vsel %vm541_vm4, %v545_v26, %v546_v28  ;;  %v791_v36 = vld [vmem:[%s1171_s3 + $0x130] sm:$0xff]  ;;  %v543_v39 = vrot.slane %v1084_v11, 2 }
  0x20   : > { %564 = vmatpush.msrb.mxu1 %v798_v47  ;;  %v359_v17 = vsel %vm344_vm0, %v330_v10, 0.0  ;;  %v334_v22 = vmax.f32 %v328_v12, 0.0  ;;  %v790_v40 = vld [vmem:[%s1171_s3 + $0x128] sm:$0xff]  ;;  %v789_v41 = vld [vmem:[%s1171_s3 + $0x120] sm:$0xff] }
  0x21   : > { %436 = vmatpush.msra.mxu0 %v771_v49  ;;  %486 = vmatpush.msra.mxu2 %v370_v55  ;;  %v409_v20 = vrot.slane %v359_v17, 1  ;;  %v364_v21 = vsel %vm349_vm3, %v335_v14, 0.0  ;;  %v542_v38 = vrot.slane %v359_v17, 2  ;;  %v837_v59 = vld [vmem:[%s1172_s4] ss:$0 sm:$0xff] }
  0x22   : > { %565 = vmatpush.msrb.mxu1 %v797_v56  ;;  %v417_v25 = vrot.slane %v364_v21, 1  ;;  %v363_v34 = vsel %vm349_vm3, %v334_v22, 0.0  ;;  %v550_v42 = vrot.slane %v364_v21, 2 }
  0x23   : > { %437 = vmatpush.msra.mxu0 %v770_v60  ;;  %784 = vmatmul.msk.f32.vlgmr.msra.gmra.mxu1 %vm421_vm1, %v414_v5  ;;  %v411_v31 = vsel %vm408_vm2, %v409_v20, %v410_v18  ;;  %v415_v37 = vrot.slane %v363_v34, 1  ;;  %v544_v43 = vsel %vm541_vm4, %v542_v38, %v543_v39  ;;  %v548_v45 = vrot.slane %v363_v34, 2 }
  0x24   : > { %487 = vmatpush.msra.mxu2 %v369_v0  ;;  %566 = vmatpush.msrb.mxu1 %v796_v1  ;;  %v418_v32 = vsel %vm408_vm2, %v413_v61, %v417_v25  ;;  %v551_v44 = vsel %vm541_vm4, %v546_v28, %v550_v42 }
  0x25   : > { %438 = vmatpush.msra.mxu0 %v769_v6  ;;  %788 = vmatmul.msk.f32.gmra.mxu3 %vm421_vm1, %v1044_v50  ;;  %v416_v29 = vsel %vm408_vm2, %v410_v18, %v415_v37  ;;  %v549_v46 = vsel %vm541_vm4, %v543_v39, %v548_v45 }
  0x26   : > { %488 = vmatpush.msra.mxu2 %v368_v8  ;;  %567 = vmatpush.msrb.mxu1 %v795_v9 }
  0x27   : > { %439 = vmatpush.msra.mxu0 %v768_v13 }
  0x28   : > { %489 = vmatpush.msra.mxu2 %v367_v15  ;;  %568 = vmatpush.msrb.mxu1 %v794_v16 }
  0x29   : > { %440 = vmatpush.msra.mxu0 %v767_v19 }
  0x2a   : > { %490 = vmatpush.msra.mxu2 %v366_v23  ;;  %569 = vmatpush.msrb.mxu1 %v793_v24 }
  0x2b   : > { %441 = vmatpush.msra.mxu0 %v766_v27  ;;  %785 = vmatmul.msk.f32.gmra.mxu1 %vm421_vm1, %v418_v32 }
  0x2c   : > { %491 = vmatpush.msra.mxu2 %v365_v30  ;;  %442 = vmatmul.f32.vlgmr.msra.gmra.mxu0 %v411_v31 }
  0x2d   : > { %786 = vmatmul.msk.f32.vlgmr.msra.gmra.mxu2 %vm344_vm0, %v330_v10  ;;  %570 = vmatpush.msrb.mxu1 %v792_v33 }
  0x2e   : > { %807 = vmatmul.msk.f32.vlgmr.msrb.gmra.mxu3 %vm421_vm1, %v547_v35 }
  0x2f   : > { %571 = vmatpush.msrb.mxu1 %v791_v36 }
  0x31   : > { %572 = vmatpush.msrb.mxu1 %v790_v40 }
  0x33   : > { %573 = vmatpush.msrb.mxu1 %v789_v41 }
  0x34   : > { %445 = vmatmul.f32.gmra.mxu0 %v416_v29  ;;  %574 = vmatmul.f32.vlgmr.msrb.gmra.mxu1 %v544_v43 }
  0x35   : > { %495 = vmatmul.f32.gmra.mxu2 %v1084_v11 }
  0x36   : > { %808 = vmatmul.msk.f32.gmra.mxu3 %vm421_vm1, %v551_v44 }
  0x3c   : > { %577 = vmatmul.f32.gmra.mxu1 %v549_v46 }
  0x9f   : > { %v516_v48 = vpop.f32.mrf.mxu3 }
  0xa0   : > { %v466_v47 = vpop.f32.mrf.mxu1 }
  0xa8   : > { %v469_v49 = vpop.f32.mrf.mxu1  ;;  %v519_v51 = vpop.f32.mrf.mxu3 }
  0xa9   : > { %v443_v50 = vpop.f32.mrf.mxu0 }
  0xaa   : > { %v467_v52 = vadd.f32 %v466_v47, %v443_v50 }
  0xb0   : > { %v493_v53 = vpop.f32.mrf.mxu2 }
  0xb1   : > { %v494_v54 = vadd.f32 %v493_v53, %v467_v52  ;;  %v575_v55 = vpop.f32.mrf.mxu1  ;;  %v598_v56 = vpop.f32.mrf.mxu3 }
  0xb2   : > { %v599_v58 = vadd.f32 %v598_v56, %v575_v55  ;;  %v446_v60 = vpop.f32.mrf.mxu0 }
  0xb3   : > { %v517_v57 = vadd.f32 %v516_v48, %v494_v54  ;;  %v470_v62 = vadd.f32 %v469_v49, %v446_v60 }
  0xb5   : > { %v604_v61 = vadd.f32 %v599_v58, %v517_v57 }
  0xb7   : > { %v610_v63 = vadd.f32 %v837_v59, %v604_v61 }
  0xb8   : > { %v496_v0 = vpop.f32.mrf.mxu2 }
  0xb9   : > { %631 = vst [vmem:[%s285_s28] sm:$0xff] %v610_v63  ;;  %v497_v1 = vadd.f32 %v496_v0, %v470_v62  ;;  %v578_v2 = vpop.f32.mrf.mxu1  ;;  %v601_v3 = vpop.f32.mrf.mxu3  ;;  %v619_v8 = vmul.f32 %v610_v63, %v610_v63 }
  0xba   : > { %v602_v5 = vadd.f32 %v601_v3, %v578_v2 }
  0xbb   : > { %v520_v4 = vadd.f32 %v519_v51, %v497_v1 }
  0xbd   : > { %v605_v6 = vadd.f32 %v602_v5, %v520_v4 }
  0xbf   : > { %v611_v7 = vadd.f32 %v837_v59, %v605_v6 }
  0xc1   : > { %v612_v9 = vadd.f32 %v611_v7, %v610_v63  ;;  %v620_v10 = vmul.f32 %v611_v7, %v611_v7  ;;  %632 = vst [vmem:[%s285_s28 + $0x8] sm:$0xff] %v611_v7 }
  0xc3   : > { %v613_v11 = vrot.slane %v612_v9, 4  ;;  %v621_v12 = vadd.f32 %v620_v10, %v619_v8 }
  0xc5   : > { %v614_v13 = vadd.f32 %v613_v11, %v612_v9  ;;  %v622_v14 = vrot.slane %v621_v12, 4 }
  0xc7   : > { %v615_v15 = vrot.slane %v614_v13, 2  ;;  %v623_v16 = vadd.f32 %v622_v14, %v621_v12 }
  0xc9   : > { %v616_v17 = vadd.f32 %v615_v15, %v614_v13  ;;  %v624_v18 = vrot.slane %v623_v16, 2 }
  0xcb   : > { %v617_v19 = vrot.slane %v616_v17, 1  ;;  %v625_v20 = vadd.f32 %v624_v18, %v623_v16 }
  0xcd   : > { %v626_v21 = vrot.slane %v625_v20, 1  ;;  %v618_v22 = vadd.f32 %v617_v19, %v616_v17 }
  0xcf   : > { %v627_v23 = vadd.f32 %v626_v21, %v625_v20 }
  0xd1   : > { %v629_v24 = vsel %vm628_vm5, %v618_v22, %v627_v23 }
  0xd2   : > { %630 = vst [vmem:[%s293_s8] sm:$0x3] %v629_v24 }
  0xd3 PF: > { %s17_s23 = sadd.s32 1, %s860_s23   ;;  %s1175_s21 = smov %s856_s22 }
  0xd4   : > { %p14_p5 = scmp.ge.s32.totalorder %s17_s23, 4   ;;  %s1176_s22 = smov %s1178_s24 }
  0xd6   :  { %16 = sbr.rel (!%p14_p5) target bundleno = 2 (0x2), region = 85 }

// kernel: _lambda_.5
= control target key start
LH: loop header
LB: loop body
LE: loop exit
PB: predicated region body
PF: predicated region fallthrough
CT: control target
= control target key end

     0   :  { %s398_s12 = smov 0   ;;  %s400_s13 = smov 0   ;;  %s430_s0 = inlined_call_operand.vmem [shape: f32[2,16,128], index: 0, kind: input, shape index: {}]   ;;  %s431_s1 = inlined_call_operand.vmem [shape: f32[1,128], index: 1, kind: input, shape index: {}]   ;;  %s432_s2 = inlined_call_operand.vmem [shape: f32[1,128], index: 2, kind: input, shape index: {}]   ;;  %s433_s3 = inlined_call_operand.vmem [shape: f32[2,16,128], index: 3, kind: output, shape index: {}]  }
   0x1   :  { %s402_s14 = smov 0  }
   0x2 LB: > { %s25_s15 = sadd.s32 1, %s372_s13  ;;  %p319_p0 = scmp.ge.s32.totalorder %s376_s14, 1  ;;  %s376_s14 = sphi %s402_s14, %s13_s14   ;;  %s372_s13 = sphi %s400_s13, %s435_s13   ;;  %s368_s12 = sphi %s398_s12, %s434_s12  }
   0x3   : > { %p27_p1 = scmp.ge.s32.totalorder %s25_s15, 2  ;;  %p158_p2 = scmp.lt.s32.totalorder %s376_s14, 3 }
   0x5   : > { %s437_s15 = smov (%p27_p1, %s25_s15), 0  ;;  %p159_p3 = pnand %p319_p0, %p158_p2 }
   0x6   : > { %p191_p4 = scmp.lt.s32.totalorder (!%p159_p3), %s368_s12, 1 }
   0x7   : > { %162 = sbr.rel (%p159_p3) target bundleno = 24 (0x18), region = 32 }
   0xc   : > { %s439_s12 = smov (!%p191_p4, %s368_s12), 1  ;;  %v352_v0 = vld [vmem:[%s431_s1] ss:$0 sm:$0xff] }
   0xd   : > { %s326_s18 = sshll.u32 %s439_s12, 4  ;;  %v353_v1 = vld [vmem:[%s432_s2] ss:$0 sm:$0xff] }
   0xe   : > { %s198_s21 = scalar_lea.vmem %s430_s0, %s326_s18  ;;  %s208_s26 = scalar_lea.vmem %s433_s3, %s326_s18 }
   0xf   : > { %v210_v2 = vld [vmem:[%s198_s21] sm:$0xff]  ;;  %v211_v3 = vld [vmem:[%s198_s21 + $0x8] sm:$0xff] }
  0x10   : > { %v216_v4 = vmul.f32 %v352_v0, %v210_v2  ;;  %v217_v5 = vmul.f32 %v352_v0, %v211_v3 }
  0x12   : > { %v222_v6 = vadd.f32 %v353_v1, %v216_v4  ;;  %v223_v7 = vadd.f32 %v353_v1, %v217_v5 }
  0x14   : > { %v224_v8 = vmax.f32 %v222_v6, 0.0  ;;  %v225_v9 = vmax.f32 %v223_v7, 0.0 }
  0x16   : > { %226 = vst [vmem:[%s208_s26] sm:$0xff] %v224_v8 }
  0x17   : > { %227 = vst [vmem:[%s208_s26 + $0x8] sm:$0xff] %v225_v9 }
  0x18 PF: > { %s13_s14 = sadd.s32 1, %s376_s14   ;;  %s434_s12 = smov %s372_s13 }
  0x19   : > { %p10_p5 = scmp.ge.s32.totalorder %s13_s14, 4   ;;  %s435_s13 = smov %s437_s15 }
  0x1b   :  { %12 = sbr.rel (!%p10_p5) target bundleno = 2 (0x2), region = 62 }

</bundles_post_ra>
